<compile_context>
chip_gen: v6e
topology: v6e:2x2x1
jax: 0.10.0
libtpu: 0.0.40
codegen_flags: <defaults>
</compile_context>

<pallas_src>
import numpy as np
import jax
import jax.numpy as jnp
from jax import lax
from jax.experimental import pallas as pl
from jax.experimental.pallas import tpu as pltpu

LEAKY_SLOPE = 0.01           # torch.nn.LeakyReLU default
KSIZE = 5
PAD = (KSIZE - 1) // 2       # 2
ETA = 32                     # eta must be 32 so 6*(32//2) == 96 feeds fc1
PHI = 16                     # phi size (power of two)
NVIEW = 4                    # identity / rot180 / parity_flip / parity_fliprot180
C1, C2 = 6, 6
CP = 8                       # channels padded to one 8-sublane tile
NTAP = KSIZE * KSIZE         # 25
NPOOL = ETA // 2             # 16 pooled eta windows
NHID = 10                    # fc1 width

HP = ETA + 2 * PAD           # 36 padded eta rows
WP = PHI + 2 * PAD           # 20 real padded phi columns
WPP = 32                     # lane-padded phi width  -> one eta row = 128 lanes
ROW = NVIEW * WPP            # 128
FRAME = HP * ROW             # 4608 lanes per sample (all 4 views)
NSEL = NVIEW * NPOOL         # 64 pooled features picked per channel

assert PHI & (PHI - 1) == 0 and WP <= WPP

# pltpu.roll is assumed to follow jnp.roll semantics (out[i] = in[i - shift]).
# _calibrate_roll() verifies this on-device before the main kernel is traced.
_ROLL_LEFT_SIGN = -1


def _calibrate_roll():
    global _ROLL_LEFT_SIGN

    def k(x_ref, o_ref):
        o_ref[...] = pltpu.roll(x_ref[...], 1, axis=1)

    x = jnp.broadcast_to(jnp.arange(128, dtype=jnp.float32), (8, 128))
    r = jax.block_until_ready(
        pl.pallas_call(k, out_shape=jax.ShapeDtypeStruct((8, 128), jnp.float32))(x))
    _ROLL_LEFT_SIGN = 1 if float(r[0, 0]) == 1.0 else -1


def _lshift(v, n):
    """Circular left shift along lanes: out[:, L] = v[:, (L + n) % FRAME]."""
    s = (_ROLL_LEFT_SIGN * n) % FRAME
    if s == 0:
        return v
    return pltpu.roll(v, s, axis=1)


# ----------------------------- fused Pallas kernel -----------------------------

def _subnet_kernel(x_ref, msk_ref, w1_ref, b1_ref, w2_ref, b2_ref,
                   smat_ref, wst_ref, fmsk_ref, oblk_ref, ksum_ref,
                   fc1b_ref, fc2w_ref, fc2b_ref, sgn_ref,
                   o_ref, a_ref):
    def leaky(v):
        return jnp.where(v > 0, v, LEAKY_SLOPE * v)

    # ---- conv1: host pre-shifted the frame into the 8 sublanes, so one roll +
    #      one aligned [8, FRAME] store per dy covers the 5 dx taps.
    x = x_ref[0]                                                    # [8, FRAME]
    for dy in range(KSIZE):
        a_ref[CP * dy:CP * (dy + 1), :] = _lshift(x, (dy - PAD) * ROW - PAD)
    h1 = jnp.dot(w1_ref[...], a_ref[0:CP * KSIZE, :],
                 preferred_element_type=jnp.float32) + b1_ref[...]  # [8, FRAME]
    h1 = leaky(h1)

    # ---- re-apply padding for conv2 (circular phi, zero eta) via masks+rolls.
    #      Roll wrap-around only lands on lanes whose mask is zero.
    msk = msk_ref[...]                                              # [3, FRAME]
    h1p = (h1 * msk[0:1, :]
           + _lshift(h1, PHI) * msk[1:2, :]
           + _lshift(h1, -PHI) * msk[2:3, :])

    # ---- conv2: 25 aligned [8, FRAME] im2col stores, one MXU matmul.
    for k in range(NTAP):
        dy, dx = divmod(k, KSIZE)
        a_ref[CP * k:CP * (k + 1), :] = _lshift(h1p, (dy - PAD) * ROW + (dx - PAD))
    y2 = jnp.dot(w2_ref[...], a_ref[...],
                 preferred_element_type=jnp.float32) + b2_ref[...]  # [8, FRAME]
    y2 = leaky(y2)

    # ---- MaxPool2d((2, PHI)): shift-max tree over phi, then the eta pair.
    #      Garbage lanes never reach the gathered pooled positions.
    m = y2
    s = 1
    while s < PHI:
        m = jnp.maximum(m, _lshift(m, s))
        s *= 2
    m = jnp.maximum(m, _lshift(m, ROW))

    # ---- gather the 4 views x 16 pooled lanes with ONE MXU matmul.
    sel = jnp.dot(m, smat_ref[...], preferred_element_type=jnp.float32)   # [8, 64]

    # ---- fc1 -> LeakyReLU -> fc2 -> parity combine, as a tiny matmul chain
    #      (no lane gathers, no reshapes/transposes of traced data).
    p_ = jnp.dot(wst_ref[...], sel, preferred_element_type=jnp.float32)   # [160, 64]
    r_ = jnp.dot(p_ * fmsk_ref[...], oblk_ref[...],
                 preferred_element_type=jnp.float32)                      # [160, 4]
    h2 = jnp.dot(ksum_ref[...], r_, preferred_element_type=jnp.float32)   # [10, 4]
    h2 = leaky(h2 + fc1b_ref[...])
    sv = jnp.dot(fc2w_ref[...], h2,
                 preferred_element_type=jnp.float32) + fc2b_ref[...]      # [1, 4]
    total = jnp.dot(sv, sgn_ref[...], preferred_element_type=jnp.float32)  # [1, 1]
    o_ref[...] = jnp.broadcast_to(total, o_ref.shape)


def _build_fused(n_samples):
    const2 = lambda i: (0, 0)
    return pl.pallas_call(
        _subnet_kernel,
        out_shape=jax.ShapeDtypeStruct((n_samples, 1, 128), jnp.float32),
        grid=(n_samples,),
        in_specs=[
            pl.BlockSpec((1, CP, FRAME), lambda i: (i, 0, 0)),     # pre-shifted frame
            pl.BlockSpec((3, FRAME), const2),                      # padding masks
            pl.BlockSpec((CP, KSIZE * CP), const2),                # conv1 weights
            pl.BlockSpec((CP, 1), const2),                         # conv1 bias
            pl.BlockSpec((CP, NTAP * CP), const2),                 # conv2 weights
            pl.BlockSpec((CP, 1), const2),                         # conv2 bias
            pl.BlockSpec((FRAME, NSEL), const2),                   # pooled-lane selection
            pl.BlockSpec((NPOOL * NHID, CP), const2),              # fc1 weight stack
            pl.BlockSpec((NPOOL * NHID, NSEL), const2),            # fc1 e-diagonal mask
            pl.BlockSpec((NSEL, NVIEW), const2),                   # per-view ones block
            pl.BlockSpec((NHID, NPOOL * NHID), const2),            # e-sum matrix
            pl.BlockSpec((NHID, 1), const2),                       # fc1 bias
            pl.BlockSpec((1, NHID), const2),                       # fc2 weight
            pl.BlockSpec((1, 1), const2),                          # fc2 bias
            pl.BlockSpec((NVIEW, 1), const2),                      # parity signs
        ],
        out_specs=pl.BlockSpec((1, 1, 128), lambda i: (i, 0, 0)),
        scratch_shapes=[pltpu.VMEM((NTAP * CP, FRAME), jnp.float32)],   # im2col
        compiler_params=pltpu.CompilerParams(
            dimension_semantics=("parallel",)),
    )


# ----------------------------- host-side layout glue -----------------------------

def _pad_circ_zero(v):
    """[..., H, W] -> circular pad W by PAD, zero pad H by PAD."""
    v = jnp.concatenate([v[..., -PAD:], v, v[..., :PAD]], axis=-1)
    pads = [(0, 0)] * (v.ndim - 2) + [(PAD, PAD), (0, 0)]
    return jnp.pad(v, pads)


def forward(x, p):
    """x: [N, 1, 32, 16] NCHW -> [N, 1]."""
    assert x.shape[1] == 1 and x.shape[2] == ETA and x.shape[3] == PHI
    n = x.shape[0]
    x0 = x[:, 0]                                                  # [N, ETA, PHI]
    views = jnp.stack(
        [x0,                       # identity
         x0[:, ::-1, ::-1],        # rotate_180
         x0[:, ::-1, :],           # parity_flip
         x0[:, :, ::-1]],          # parity_fliprotate_180
        axis=1)                                                   # [N, 4, ETA, PHI]
    v = _pad_circ_zero(views)                                     # [N, 4, 36, 20]
    v = jnp.pad(v, ((0, 0), (0, 0), (0, 0), (0, WPP - WP)))        # [N, 4, 36, 32]
    frame = v.transpose(0, 2, 1, 3).reshape(n, FRAME)              # (eta, view, phi)
    # 8 pre-shifted copies on the sublanes (row r = frame shifted left by r)
    xpre = jnp.stack([jnp.roll(frame, -r, axis=-1) for r in range(CP)], axis=1)
    out = _build_fused(n)(
        xpre, p["masks"], p["w1e"], p["b1p"], p["w2e"], p["b2p"],
        p["selmat"], p["wstack"], p["fmask"], p["oneblk"], p["ksum"],
        p["fc1b_col"], p["fc2w_row"], p["fc2b_11"], p["signs"])
    return out[:, 0, :1]


# ----------------------------- parameters -----------------------------

def _derived(w1, b1, w2, b2, fc1w, fc1b, fc2w, fc2b):
    w1, b1, w2, b2 = map(np.asarray, (w1, b1, w2, b2))
    fc1w, fc1b, fc2w, fc2b = map(np.asarray, (fc1w, fc1b, fc2w, fc2b))

    # re-pad masks: interior / phi-low-pad (from lane L+PHI) / phi-high-pad (L-PHI)
    keep = np.zeros((HP, NVIEW, WPP), np.float32)
    lo = np.zeros_like(keep)
    hi = np.zeros_like(keep)
    keep[PAD:HP - PAD, :, PAD:WP - PAD] = 1.0
    lo[PAD:HP - PAD, :, :PAD] = 1.0
    hi[PAD:HP - PAD, :, WP - PAD:WP] = 1.0
    masks = np.stack([keep.reshape(-1), lo.reshape(-1), hi.reshape(-1)], axis=0)

    # conv1 weights: column dy*8 + r  <->  tap (dy, dx=r), cin = 0
    w1e = np.zeros((CP, KSIZE * CP), np.float32)
    for dy in range(KSIZE):
        w1e[:C1, dy * CP:dy * CP + KSIZE] = w1[:, 0, dy, :]
    b1p = np.zeros((CP, 1), np.float32)
    b1p[:C1, 0] = b1

    # conv2 weights: column k*8 + ci  <->  tap k = dy*5+dx, input channel ci
    w2e = np.zeros((CP, NTAP * CP), np.float32)
    for k in range(NTAP):
        dy, dx = divmod(k, KSIZE)
        w2e[:C2, k * CP:k * CP + C1] = w2[:, :, dy, dx]
    b2p = np.zeros((CP, 1), np.float32)
    b2p[:C2, 0] = b2

    # pooled-lane selection matrix: column v*16+e picks lane (2+2e, v, phi=2)
    selmat = np.zeros((FRAME, NSEL), np.float32)
    for v_ in range(NVIEW):
        for e in range(NPOOL):
            lane = (PAD + 2 * e) * ROW + v_ * WPP + PAD
            selmat[lane, v_ * NPOOL + e] = 1.0

    # fc1 as matmul chain:  h2[k, v] = sum_e sum_c fc1w[k, c*16+e] * feat[c, v, e]
    f1 = fc1w.reshape(NHID, C2, NPOOL)
    wstack = np.zeros((NPOOL * NHID, CP), np.float32)
    for e in range(NPOOL):
        for kk in range(NHID):
            wstack[e * NHID + kk, :C2] = f1[kk, :, e]
    fmask = np.zeros((NPOOL * NHID, NSEL), np.float32)
    for e in range(NPOOL):
        for v_ in range(NVIEW):
            fmask[e * NHID:(e + 1) * NHID, v_ * NPOOL + e] = 1.0
    oneblk = np.zeros((NSEL, NVIEW), np.float32)
    for v_ in range(NVIEW):
        oneblk[v_ * NPOOL:(v_ + 1) * NPOOL, v_] = 1.0
    ksum = np.zeros((NHID, NPOOL * NHID), np.float32)
    for e in range(NPOOL):
        for kk in range(NHID):
            ksum[kk, e * NHID + kk] = 1.0

    signs = np.array([[1.0], [1.0], [-1.0], [-1.0]], np.float32)

    out = {
        "masks": masks, "w1e": w1e, "b1p": b1p, "w2e": w2e, "b2p": b2p,
        "selmat": selmat, "wstack": wstack, "fmask": fmask, "oneblk": oneblk,
        "ksum": ksum, "fc1b_col": fc1b.reshape(NHID, 1),
        "fc2w_row": fc2w.reshape(1, NHID), "fc2b_11": fc2b.reshape(1, 1),
        "signs": signs,
    }
    return {k: jnp.asarray(v) for k, v in out.items()}


def init_params(key):
    ks = jax.random.split(key, 8)

    def u(k, shape, fan_in):
        bnd = 1.0 / np.sqrt(fan_in)
        return jax.random.uniform(k, shape, jnp.float32, -bnd, bnd)

    w1 = u(ks[0], (C1, 1, KSIZE, KSIZE), 1 * KSIZE * KSIZE)
    b1 = u(ks[1], (C1,), 1 * KSIZE * KSIZE)
    w2 = u(ks[2], (C2, C1, KSIZE, KSIZE), C1 * KSIZE * KSIZE)
    b2 = u(ks[3], (C2,), C1 * KSIZE * KSIZE)
    fc1w = u(ks[4], (NHID, C2 * NPOOL), C2 * NPOOL)
    fc1b = u(ks[5], (NHID,), C2 * NPOOL)
    fc2w = u(ks[6], (1, NHID), NHID)
    fc2b = u(ks[7], (1,), NHID)

    params = {"w1": w1, "b1": b1, "w2": w2, "b2": b2,
              "fc1w": fc1w, "fc1b": fc1b, "fc2w": fc2w, "fc2b": fc2b}
    params.update(_derived(w1, b1, w2, b2, fc1w, fc1b, fc2w, fc2b))
    return params


# ----------------------------- pure-JAX reference -----------------------------

def _leaky(x):
    return jnp.where(x > 0, x, LEAKY_SLOPE * x)


def _ref_subnet(x, p):
    def conv(a, w, b):
        y = lax.conv_general_dilated(a, w, (1, 1), "VALID",
                                     dimension_numbers=("NCHW", "OIHW", "NCHW"),
                                     precision=lax.Precision.HIGHEST)
        return y + b.reshape(1, -1, 1, 1)

    B, _, H, W = x.shape
    y = _leaky(conv(_pad_circ_zero(x), p["w1"], p["b1"]))
    y = _leaky(conv(_pad_circ_zero(y), p["w2"], p["b2"]))
    pooled = y.reshape(B, C2, H // 2, 2, W).max(axis=(3, 4))     # MaxPool2d((2, W))
    feat = pooled.reshape(B, C2 * (H // 2))                      # torch.flatten order
    h = _leaky(feat @ p["fc1w"].T + p["fc1b"])
    return h @ p["fc2w"].T + p["fc2b"]


def _ref_forward(x, p):
    return (_ref_subnet(x, p) + _ref_subnet(x[:, :, ::-1, ::-1], p)
            - _ref_subnet(x[:, :, ::-1, :], p) - _ref_subnet(x[:, :, :, ::-1], p))


# ----------------------------- main -----------------------------

if __name__ == "__main__":
    key = jax.random.PRNGKey(0)
    kx, kp = jax.random.split(key)
    x = jax.random.normal(kx, (2, 1, ETA, PHI), jnp.float32)     # [N, 1, 32, 16]
    params = init_params(kp)

    _calibrate_roll()                  # resolve pltpu.roll direction before tracing

    fwd = jax.jit(forward)
    out = jax.block_until_ready(fwd(x, params))
    assert out.shape == (2, 1)

    ref = _ref_forward(x, params)
    np.testing.assert_allclose(np.asarray(out), np.asarray(ref), rtol=1e-2, atol=1e-2)

    print("KERNEL_OK")
</pallas_src>

<mosaic_0001>
module attributes {stable_mosaic.version = 11 : i64} {
  func.func @k(%arg0: memref<8x128xf32, #tpu.memory_space<vmem>>, %arg1: memref<8x128xf32, #tpu.memory_space<vmem>>) attributes {dimension_semantics = [], scalar_prefetch = 0 : i64, scratch_operands = 0 : i64, tpu.core_type = #tpu.core_type<tc>} {
    %c0 = arith.constant 0 : index
    %c0_0 = arith.constant 0 : index
    %0 = vector.load %arg0[%c0, %c0_0] : memref<8x128xf32, #tpu.memory_space<vmem>>, vector<8x128xf32>
    %c1_i32 = arith.constant 1 : i32
    %1 = tpu.dynamic_rotate %0 by %c1_i32 dim 1 : vector<8x128xf32>, i32 -> vector<8x128xf32>
    %c0_1 = arith.constant 0 : index
    %c0_2 = arith.constant 0 : index
    %2 = vector.load %arg1[%c0_1, %c0_2] : memref<8x128xf32, #tpu.memory_space<vmem>>, vector<8x128xf32>
    tpu.vector_store %arg1[%c0_1, %c0_2], %1 {strides = array<i32>} : memref<8x128xf32, #tpu.memory_space<vmem>>, vector<8x128xf32>,
    return
  }
}

</mosaic_0001>

<bundles_post_ra>
// kernel: tpu_custom_call.1
= control target key start
LH: loop header
LB: loop body
LE: loop exit
PB: predicated region body
PF: predicated region fallthrough
CT: control target
= control target key end

     0   :  { %6 = vsyncpa [#allocation3], 0  ;;  %s106_s0 = inlined_call_operand.hbm [shape: f32[8,128], index: 0, kind: input, shape index: {}]   ;;  %s107_s1 = inlined_call_operand.hbm [shape: f32[8,128], index: 1, kind: output, shape index: {}]  }
   0x1   :  { %7 = vsyncpa [#allocation4], 0  ;;  %s87_s6 = smov [#allocation2]  }
   0x2   :  { %s14_s7 = sshll.u32 %s87_s6, 4  ;;  %s15_s7 = int_to_ptr.vmem [resolvable:$true] %s14_s7 }
   0x3   :  { %s51_s8 = scalar_lea.vmem %s15_s7, 128  ;;  %p56_p1 = scmp.lt.s32.totalorder %s15_s7, %s15_s7 }
   0x4   :  { %p52_p0 = scmp.ne.s32.totalorder %s15_s7, %s51_s8  ;;  %p57_p2 = scmp.lt.s32.totalorder %s51_s8, %s51_s8 }
   0x6   :  { %p58_p3 = por %p57_p2, %p56_p1 }
   0x8   :  { %p59_p4 = pnand %p58_p3, %p52_p0 }
   0xa   :  { %62 = shalt.err (!%p59_p4)
}
   0xb   :  { %17 = dma.hbm_to_vmem [thread:$0]  %s106_s0, 128, %s15_s7, [#allocation3]  }
   0xc   :  { %83 = dma.done.wait [#allocation3], 128  }
   0xd   :  { %84 = vsyncadd [#allocation3], 4294967168  ;;  %v21_v0 = vld [vmem:[#allocation2] sm:$0xff]  ;;  %s88_s11 = smov 1   ;;  %s89_s12 = smov [#allocation5]  }
   0xe   :  { %22 = vrot.lane.b32.xlu0 %v21_v0, %s88_s11  ;;  %s31_s13 = sshll.u32 %s89_s12, 4  ;;  %s32_s13 = int_to_ptr.vmem [resolvable:$true] %s31_s13 }
   0xf   :  { %s63_s14 = scalar_lea.vmem %s32_s13, 128  ;;  %p68_p6 = scmp.lt.s32.totalorder %s32_s13, %s32_s13 }
  0x10   :  { %p64_p5 = scmp.ne.s32.totalorder %s32_s13, %s63_s14  ;;  %p69_p7 = scmp.lt.s32.totalorder %s63_s14, %s63_s14 }
  0x12   :  { %p70_p8 = por %p69_p7, %p68_p6 }
  0x14   :  { %p71_p9 = pnand %p70_p8, %p64_p5 }
  0x80   :  { %v23_v1 = vpop.permute.xlu0 %22 }
  0x81   :  { %24 = vst [vmem:[#allocation5] sm:$0xff] %v23_v1 }
  0x82   :  { %74 = shalt.err (!%p71_p9)
}
  0x83   :  { %34 = dma.vmem_to_hbm [thread:$0]  %s32_s13, 128, %s107_s1, [#allocation4]  }
  0x84   :  { %85 = dma.done.wait [#allocation4], 128  }
  0x85   :  { %86 = vsyncadd [#allocation4], 4294967168 }
  0x86   :  { %38 = vsyncpa [#allocation3], 1 }
  0x87   :  { %39 = vsyncpa [#allocation4], 1 }

</bundles_post_ra>
